<compile_context>
chip_gen: v5e
topology: v5e:2x2
jax: 0.10.0
libtpu: 0.0.40
codegen_flags: <defaults>
</compile_context>

<pallas_src>
import jax
import jax.numpy as jnp
from jax import lax
from jax.experimental import pallas as pl
from jax.experimental.pallas import tpu as pltpu


def _reg_loss_kernel(ind_ref,   # (bblk, 1, M)   int32
                     feat_ref,  # (bblk, D, HW)  f32
                     tgt_ref,   # (bblk, D, M)   f32
                     msk_ref,   # (bblk, 1, M)   f32
                     out_ref):  # (1, 1, 2)      f32   [loss_sum, mask_count]
    bblk, D, HW = feat_ref.shape
    M = ind_ref.shape[-1]

    # Shared across the fused batches of this step (hoisted out of the loop).
    hw_iota = lax.broadcasted_iota(jnp.int32, (HW, M), 0)

    loss_sum = jnp.float32(0.0)
    mask_sum = jnp.float32(0.0)
    for bi in range(bblk):                                # static, small unroll
        # ---- on-chip gather via one-hot matmul (MXU) ------------------------
        # pred[:, m] = feat[bi, :, ind[bi, m]].  The one-hot (0/1) side is
        # exact in any matmul precision; feat is split hi/lo so the selected
        # values are reproduced at ~f32 precision even under bf16 MXU passes.
        onehot = (hw_iota == ind_ref[bi]).astype(jnp.float32)            # (HW, M)
        feat_b = feat_ref[bi]                                            # (D, HW)
        feat_hi = feat_b.astype(jnp.bfloat16).astype(jnp.float32)
        feat_lo = feat_b - feat_hi
        pred = (jnp.dot(feat_hi, onehot, preferred_element_type=jnp.float32)
                + jnp.dot(feat_lo, onehot, preferred_element_type=jnp.float32))

        # ---- smooth-L1 on (D, M), lane-dense along M ------------------------
        msk = msk_ref[bi]                                                # (1, M)
        diff = (pred - tgt_ref[bi]) * msk                                # (D, M)
        absd = jnp.abs(diff)
        elem = jnp.where(absd < 1.0, 0.5 * absd * absd, absd - 0.5)      # beta = 1

        loss_sum = loss_sum + jnp.sum(elem)
        mask_sum = mask_sum + jnp.sum(msk)

    # Merged per-step writeback: lane 0 = loss sum, lane 1 = mask count.
    lane = lax.broadcasted_iota(jnp.int32, (1, 1, 2), 2)
    out_ref[...] = jnp.where(lane == 0, loss_sum, mask_sum)


def _pick_bblk(B, D, HW):
    """Batches fused per grid step."""
    bblk = min(B, max(1, 8 // max(D, 1)))       # fill vreg sublanes (D is usually tiny)
    # Keep the (double-buffered) feat slab modest so it also fits v7x VMEM.
    while bblk > 1 and 2 * bblk * D * HW * 4 > (8 << 20):
        bblk -= 1
    # Keep >=2 grid steps so both v7x TensorCores get work, and require bblk | B.
    while bblk > 1 and (B % bblk != 0 or B // bblk < 2):
        bblk -= 1
    return bblk


def reg_loss(output_nchw, mask, ind, target):
    """output_nchw: (B, D, H, W); mask: (B, M); ind: (B, M) int; target: (B, M, D)."""
    B, D, H, W = output_nchw.shape
    M = ind.shape[1]
    HW = H * W
    M_pad = ((M + 127) // 128) * 128            # lane-dense M

    # Free reshape of contiguous NCHW -- no transpose of the feature map.
    feat = output_nchw.astype(jnp.float32).reshape(B, D, HW)
    # Tiny (B*M*D) transpose so smooth-L1 runs lane-dense along M.
    tgt_t = jnp.transpose(target.astype(jnp.float32), (0, 2, 1))          # (B, D, M)
    mask_f = mask.astype(jnp.float32)
    # Clamp like jnp.take_along_axis (PyTorch .gather() would error on OOB ind).
    ind_i = jnp.clip(ind.astype(jnp.int32), 0, HW - 1)

    if M_pad != M:
        pad = M_pad - M
        tgt_t = jnp.pad(tgt_t, ((0, 0), (0, 0), (0, pad)))
        mask_f = jnp.pad(mask_f, ((0, 0), (0, pad)))                      # mask=0 -> no contribution
        ind_i = jnp.pad(ind_i, ((0, 0), (0, pad)))                        # ind=0 is a valid index

    ind3 = ind_i.reshape(B, 1, M_pad)
    mask3 = mask_f.reshape(B, 1, M_pad)

    bblk = _pick_bblk(B, D, HW)
    nsteps = B // bblk

    out = pl.pallas_call(
        _reg_loss_kernel,
        out_shape=jax.ShapeDtypeStruct((nsteps, 1, 2), jnp.float32),
        grid_spec=pltpu.PrefetchScalarGridSpec(
            num_scalar_prefetch=0,
            grid=(nsteps,),
            in_specs=[
                pl.BlockSpec((bblk, 1, M_pad), lambda s: (s, 0, 0)),      # ind
                pl.BlockSpec((bblk, D, HW), lambda s: (s, 0, 0)),         # feat slab (auto-pipelined)
                pl.BlockSpec((bblk, D, M_pad), lambda s: (s, 0, 0)),      # target (transposed)
                pl.BlockSpec((bblk, 1, M_pad), lambda s: (s, 0, 0)),      # mask
            ],
            out_specs=pl.BlockSpec((1, 1, 2), lambda s: (s, 0, 0)),       # [loss_sum, mask_count]
        ),
        compiler_params=pltpu.CompilerParams(
            dimension_semantics=("parallel",)),                            # steps independent (2 TCs on v7x)
    )(ind3, feat, tgt_t, mask3)

    loss_sum = jnp.sum(out[:, 0, 0])
    num = jnp.sum(out[:, 0, 1])
    return loss_sum / (num + 0.0001)


def reg_loss_ref(output_nchw, mask, ind, target):
    """Pure-JAX reference mirroring the PyTorch code."""
    B, D, H, W = output_nchw.shape
    M = ind.shape[1]
    feat = jnp.transpose(output_nchw, (0, 2, 3, 1)).reshape(B, H * W, D)
    idx = jnp.broadcast_to(ind[..., None].astype(jnp.int32), (B, M, D))
    pred = jnp.take_along_axis(feat, idx, axis=1)
    num = jnp.sum(mask.astype(jnp.float32))
    m = mask.astype(jnp.float32)[..., None]
    regr = pred * m
    gt = target * m
    d = jnp.abs(regr - gt)
    sl1 = jnp.where(d < 1.0, 0.5 * d * d, d - 0.5)
    return jnp.sum(sl1) / (num + 0.0001)


if __name__ == "__main__":
    key = jax.random.PRNGKey(0)
    B, D, H, W, M = 2, 4, 16, 16, 8
    k1, k2, k3, k4 = jax.random.split(key, 4)
    output = jax.random.normal(k1, (B, D, H, W), dtype=jnp.float32)
    target = jax.random.normal(k2, (B, M, D), dtype=jnp.float32)
    ind = jax.random.randint(k3, (B, M), 0, H * W, dtype=jnp.int32)
    mask = (jax.random.uniform(k4, (B, M)) > 0.3).astype(jnp.float32)

    loss = reg_loss(output, mask, ind, target)
    jax.block_until_ready(loss)

    ref = reg_loss_ref(output, mask, ind, target)
    assert jnp.allclose(loss, ref, rtol=1e-5, atol=1e-5), (loss, ref)
    print("KERNEL_OK")
</pallas_src>

<mosaic_0001>
module attributes {stable_mosaic.version = 11 : i64} {
  func.func @_reg_loss_kernel(%arg0: i32, %arg1: memref<1x1x128xi32, #tpu.memory_space<vmem>>, %arg2: memref<1x4x256xf32, #tpu.memory_space<vmem>>, %arg3: memref<1x4x128xf32, #tpu.memory_space<vmem>>, %arg4: memref<1x1x128xf32, #tpu.memory_space<vmem>>, %arg5: memref<1x1x2xf32, #tpu.memory_space<vmem>>) attributes {dimension_semantics = [#tpu.dimension_semantics<parallel>], iteration_bounds = array<i64: 2>, scalar_prefetch = 0 : i64, scratch_operands = 0 : i64, tpu.core_type = #tpu.core_type<tc>, window_params = [{transform_indices = @transform_0, window_bounds = array<i64: 1, 1, 128>}, {transform_indices = @transform_1, window_bounds = array<i64: 1, 4, 256>}, {transform_indices = @transform_2, window_bounds = array<i64: 1, 4, 128>}, {transform_indices = @transform_3, window_bounds = array<i64: 1, 1, 128>}, {transform_indices = @transform_4, window_bounds = array<i64: 1, 1, 2>}]} {
    %0 = tpu.iota {dimensions = array<i32: 0>} : vector<256x128xi32>
    %c0 = arith.constant 0 : index
    %c0_0 = arith.constant 0 : index
    %c0_1 = arith.constant 0 : index
    %1 = vector.load %arg1[%c0, %c0_0, %c0_1] : memref<1x1x128xi32, #tpu.memory_space<vmem>>, vector<1x1x128xi32>
    %2 = vector.shape_cast %1 : vector<1x1x128xi32> to vector<1x128xi32>
    %3 = vector.broadcast %2 : vector<1x128xi32> to vector<256x128xi32>
    %4 = arith.cmpi eq, %0, %3 : vector<256x128xi32>
    %5 = arith.extui %4 : vector<256x128xi1> to vector<256x128xi32>
    %6 = arith.sitofp %5 : vector<256x128xi32> to vector<256x128xf32>
    %c0_2 = arith.constant 0 : index
    %c0_3 = arith.constant 0 : index
    %c0_4 = arith.constant 0 : index
    %7 = vector.load %arg2[%c0_2, %c0_3, %c0_4] : memref<1x4x256xf32, #tpu.memory_space<vmem>>, vector<1x4x256xf32>
    %8 = vector.shape_cast %7 : vector<1x4x256xf32> to vector<4x256xf32>
    %9 = arith.truncf %8 : vector<4x256xf32> to vector<4x256xbf16>
    %10 = arith.extf %9 : vector<4x256xbf16> to vector<4x256xf32>
    %11 = arith.subf %8, %10 : vector<4x256xf32>
    %cst = arith.constant dense<0.000000e+00> : vector<4x128xf32>
    %12 = tpu.matmul %10, %6, %cst {dimension_numbers = #tpu.dot_dimension_numbers<[1], [0], [0], [1], [0, 0, 1, 1], [], []>} : vector<4x256xf32>, vector<256x128xf32>, vector<4x128xf32> -> vector<4x128xf32>
    %cst_5 = arith.constant dense<0.000000e+00> : vector<4x128xf32>
    %13 = tpu.matmul %11, %6, %cst_5 {dimension_numbers = #tpu.dot_dimension_numbers<[1], [0], [0], [1], [0, 0, 1, 1], [], []>} : vector<4x256xf32>, vector<256x128xf32>, vector<4x128xf32> -> vector<4x128xf32>
    %14 = arith.addf %12, %13 : vector<4x128xf32>
    %c0_6 = arith.constant 0 : index
    %c0_7 = arith.constant 0 : index
    %c0_8 = arith.constant 0 : index
    %15 = vector.load %arg4[%c0_6, %c0_7, %c0_8] : memref<1x1x128xf32, #tpu.memory_space<vmem>>, vector<1x1x128xf32>
    %16 = vector.shape_cast %15 : vector<1x1x128xf32> to vector<1x128xf32>
    %c0_9 = arith.constant 0 : index
    %c0_10 = arith.constant 0 : index
    %c0_11 = arith.constant 0 : index
    %17 = vector.load %arg3[%c0_9, %c0_10, %c0_11] : memref<1x4x128xf32, #tpu.memory_space<vmem>>, vector<1x4x128xf32>
    %18 = vector.shape_cast %17 : vector<1x4x128xf32> to vector<4x128xf32>
    %19 = arith.subf %14, %18 : vector<4x128xf32>
    %20 = vector.broadcast %16 : vector<1x128xf32> to vector<4x128xf32>
    %21 = arith.mulf %19, %20 : vector<4x128xf32>
    %22 = math.absf %21 : vector<4x128xf32>
    %cst_12 = arith.constant 1.000000e+00 : f32
    %23 = vector.broadcast %cst_12 : f32 to vector<4x128xf32>
    %24 = arith.cmpf olt, %22, %23 : vector<4x128xf32>
    %cst_13 = arith.constant 5.000000e-01 : f32
    %25 = vector.broadcast %cst_13 : f32 to vector<4x128xf32>
    %26 = arith.mulf %25, %22 : vector<4x128xf32>
    %27 = arith.mulf %26, %22 : vector<4x128xf32>
    %cst_14 = arith.constant 5.000000e-01 : f32
    %28 = vector.broadcast %cst_14 : f32 to vector<4x128xf32>
    %29 = arith.subf %22, %28 : vector<4x128xf32>
    %30 = arith.select %24, %27, %29 : vector<4x128xi1>, vector<4x128xf32>
    %31 = vector.shape_cast %30 : vector<4x128xf32> to vector<1x4x128xf32>
    %cst_15 = arith.constant dense<0.000000e+00> : vector<1xf32>
    %32 = vector.multi_reduction <add>, %31, %cst_15 [1, 2] : vector<1x4x128xf32> to vector<1xf32>
    %33 = vector.shape_cast %32 : vector<1xf32> to vector<1x1x1xf32>
    %34 = vector.extract %33[0, 0, 0] : f32 from vector<1x1x1xf32>
    %cst_16 = arith.constant 0.000000e+00 : f32
    %35 = arith.addf %cst_16, %34 : f32
    %36 = vector.shape_cast %16 : vector<1x128xf32> to vector<1x1x128xf32>
    %cst_17 = arith.constant dense<0.000000e+00> : vector<1xf32>
    %37 = vector.multi_reduction <add>, %36, %cst_17 [1, 2] : vector<1x1x128xf32> to vector<1xf32>
    %38 = vector.shape_cast %37 : vector<1xf32> to vector<1x1x1xf32>
    %39 = vector.extract %38[0, 0, 0] : f32 from vector<1x1x1xf32>
    %cst_18 = arith.constant 0.000000e+00 : f32
    %40 = arith.addf %cst_18, %39 : f32
    %41 = tpu.iota {dimensions = array<i32: 2>} : vector<1x1x2xi32>
    %c0_i32 = arith.constant 0 : i32
    %42 = vector.broadcast %c0_i32 : i32 to vector<1x1x2xi32>
    %43 = arith.cmpi eq, %41, %42 : vector<1x1x2xi32>
    %44 = vector.broadcast %35 : f32 to vector<1x1x2xf32>
    %45 = vector.broadcast %40 : f32 to vector<1x1x2xf32>
    %46 = arith.select %43, %44, %45 : vector<1x1x2xi1>, vector<1x1x2xf32>
    %c0_19 = arith.constant 0 : index
    %c0_20 = arith.constant 0 : index
    %c0_21 = arith.constant 0 : index
    %47 = vector.load %arg5[%c0_19, %c0_20, %c0_21] : memref<1x1x2xf32, #tpu.memory_space<vmem>>, vector<1x1x2xf32>
    tpu.vector_store %arg5[%c0_19, %c0_20, %c0_21], %46 {strides = array<i32>} : memref<1x1x2xf32, #tpu.memory_space<vmem>>, vector<1x1x2xf32>,
    return
  }
  func.func @transform_0(%arg0: i32) -> (i32, i32, i32) {
    %c0_i32 = arith.constant 0 : i32
    %c0_i32_0 = arith.constant 0 : i32
    %c0_i32_1 = arith.constant 0 : i32
    return %arg0, %c0_i32, %c0_i32_0 : i32, i32, i32
  }
  func.func @transform_1(%arg0: i32) -> (i32, i32, i32) {
    %c0_i32 = arith.constant 0 : i32
    %c0_i32_0 = arith.constant 0 : i32
    %c0_i32_1 = arith.constant 0 : i32
    return %arg0, %c0_i32, %c0_i32_0 : i32, i32, i32
  }
  func.func @transform_2(%arg0: i32) -> (i32, i32, i32) {
    %c0_i32 = arith.constant 0 : i32
    %c0_i32_0 = arith.constant 0 : i32
    %c0_i32_1 = arith.constant 0 : i32
    return %arg0, %c0_i32, %c0_i32_0 : i32, i32, i32
  }
  func.func @transform_3(%arg0: i32) -> (i32, i32, i32) {
    %c0_i32 = arith.constant 0 : i32
    %c0_i32_0 = arith.constant 0 : i32
    %c0_i32_1 = arith.constant 0 : i32
    return %arg0, %c0_i32, %c0_i32_0 : i32, i32, i32
  }
  func.func @transform_4(%arg0: i32) -> (i32, i32, i32) {
    %c0_i32 = arith.constant 0 : i32
    %c0_i32_0 = arith.constant 0 : i32
    %c0_i32_1 = arith.constant 0 : i32
    return %arg0, %c0_i32, %c0_i32_0 : i32, i32, i32
  }
}

</mosaic_0001>

<bundles_post_ra>
// kernel: tpu_custom_call.1
= control target key start
LH: loop header
LB: loop body
LE: loop exit
PB: predicated region body
PF: predicated region fallthrough
CT: control target
= control target key end

     0   :  { %s1457_s0 = inlined_call_operand.hbm [shape: s32[2,1,128], index: 0, kind: input, shape index: {}]   ;;  %s1458_s1 = inlined_call_operand.hbm [shape: f32[2,4,256], index: 1, kind: input, shape index: {}]   ;;  %s1459_s2 = inlined_call_operand.hbm [shape: f32[2,4,128], index: 2, kind: input, shape index: {}]   ;;  %s1460_s3 = inlined_call_operand.vmem [shape: f32[2,1,128], index: 3, kind: input, shape index: {}]   ;;  %s1461_s4 = inlined_call_operand.hbm [shape: f32[2,1,2], index: 4, kind: output, shape index: {}]  }
   0x1   :  { %1463 = sst [smem:[#allocation14_spill]] %s1458_s1 }
   0x2   :  { %9 = vsyncpa [#allocation3], 0 }
   0x3   :  { %11 = vsyncpa [#allocation3 + $0x1], 0 }
   0x4   :  { %12 = vsyncpa [#allocation6], 0 }
   0x5   :  { %14 = vsyncpa [#allocation6 + $0x1], 0 }
   0x6   :  { %15 = vsyncpa [#allocation4], 0 }
   0x7   :  { %17 = vsyncpa [#allocation4 + $0x1], 0  ;;  %s1067_s15 = smov 0   ;;  %s1069_s16 = smov 0  }
   0x8   :  { %s1071_s17 = smov 0   ;;  %s1073_s18 = smov 0  }
   0x9 LB: > { %1464 = sst [smem:[#allocation12_spill]] %s1035_s17  ;;  %s1088_s19 = sadd.s32 4294967295, %s1039_s18   ;;  %s1039_s18 = sphi %s1073_s18, %s1476_s18   ;;  %s1035_s17 = sphi %s1071_s17, %s1473_s17   ;;  %s1031_s16 = sphi %s1069_s16, %s1475_s16   ;;  %s1027_s15 = sphi %s1067_s15, %s1474_s15  }
   0xa   : > { %s705_s20 = sadd.s32 4294967294, %s1039_s18   ;;  %s1092_s21 = sadd.s32 1, %s1039_s18  }
   0xb   : > { %s30_s22 = sadd.s32 1, %s1035_s17  ;;  %s27_s23 = ssub.s32 %s1039_s18, %s1092_s21 }
   0xc   : > { %p37_p0 = scmp.ne.s32.totalorder %s1035_s17, %s1031_s16  ;;  %p28_p1 = scmp.eq.s32.totalorder %s27_s23, 0 }
   0xd   : > { %p38_p2 = scmp.eq.s32.totalorder %s1039_s18, 0  ;;  %p43_p3 = scmp.ne.s32.totalorder %s1031_s16, %s1027_s15 }
   0xe   : > { %p44_p4 = scmp.eq.s32.totalorder %s1088_s19, 0  ;;  %p145_p7 = scmp.eq.s32.totalorder %s1088_s19, 1 }
   0xf   : > { %s1104_s24 = scalar_select %p28_p1, %s1035_s17, %s30_s22  }
  0x10   : > { %p39_p5 = por %p38_p2, %p37_p0  ;;  %p1106_p6 = por %p44_p4, %p43_p3 }
  0x11   : > { %1465 = sst [smem:[#allocation13_spill]] %s1104_s24  ;;  %p151_p8 = scmp.eq.s32.totalorder %s705_s20, 1 }
  0x12   : > { %p707_p9 = scmp.ge.s32.totalorder %s1039_s18, 2  ;;  %p842_p10 = scmp.lt.s32.totalorder %s1039_s18, 2 }
  0x13   : > { %p1113_p11 = por %p145_p7, %p37_p0  ;;  %p1117_p12 = por %p151_p8, %p43_p3 }
  0x14   : > { %s1122_s28 = sand.u32 1, %s1035_s17   ;;  %p1124_p13 = pnand %p842_p10, %p39_p5 }
  0x15   : > { %s188_s30 = sand.u32 1, %s1039_s18   ;;  %s708_s5 = sshll.u32 %s1122_s28, 3 }
  0x16   : > { %s815_s6 = sshll.u32 %s1039_s18, 3  ;;  %s1470_s1 = sld [smem:[#allocation14_spill]] }
  0x17   : > { %s192_s10 = scalar_lea.vmem [#allocation5], %s708_s5  ;;  %p713_p0 = scmp.ge.s32.totalorder %s1039_s18, 1 }
  0x18   : > { %s201_s11 = sshll.u32 %s192_s10, 4  ;;  %s1135_s13 = scalar_lea.sflag [#allocation6], %s188_s30  ;;  %s202_s11 = int_to_ptr.vmem [resolvable:$true] %s201_s11 }
  0x19   : > { %p883_p2 = pneg %p1124_p13 }
  0x1c   : > { %s197_s9 = scalar_lea.hbm %s1470_s1, %s815_s6  ;;  %s886_s5 = scalar_lea.hbm %s1470_s1, 16 }
  0x1d   : > { %s199_s12 = sshll.u32 %s197_s9, 4  ;;  %s200_s12 = int_to_ptr.hbm [resolvable:$true] %s199_s12 }
  0x1e   : > { %s879_s14 = sshra.s32 %s200_s12, 4  ;;  %s880_s14 = int_to_ptr.hbm [resolvable:$true] %s879_s14 }
  0x1f   : > { %s881_s20 = scalar_lea.hbm %s880_s14, 8  ;;  %p887_p5 = scmp.lt.s32.totalorder %s880_s14, %s1470_s1 }
  0x20   : > { %p882_p1 = scmp.ne.s32.totalorder %s880_s14, %s881_s20  ;;  %p888_p7 = scmp.lt.s32.totalorder %s886_s5, %s881_s20 }
  0x22   : > { %p884_p3 = pnand %p883_p2, %p882_p1  ;;  %p889_p8 = por %p888_p7, %p887_p5 }
  0x24   : > { %p885_p4 = pneg %p884_p3 }
  0x26   : > { %p890_p10 = pnand %p889_p8, %p885_p4 }
  0x28   : > { %893 = shalt.err (!%p890_p10)
}
  0x29   : > { %834 = dma.hbm_to_vmem [thread:$0]  (!%p1124_p13), %s200_s12, 128, %s202_s11, %s1135_s13  }
  0x2a   : > { %p231_p1 = scmp.lt.s32.totalorder %s1039_s18, 3  ;;  %s177_s9 = scalar_lea.hbm %s1457_s0, %s1039_s18 }
  0x2b   : > { %s179_s14 = sshll.u32 %s177_s9, 4  ;;  %s174_s20 = scalar_lea.vmem [#allocation2], %s1122_s28  ;;  %s180_s14 = int_to_ptr.hbm [resolvable:$true] %s179_s14 }
  0x2c   : > { %p1158_p3 = pnand %p713_p0, %p231_p1  ;;  %s181_s22 = sshll.u32 %s174_s20, 4  ;;  %s182_s22 = int_to_ptr.vmem [resolvable:$true] %s181_s22 }
  0x2d   : > { %s711_s23 = sshll.u32 %s1122_s28, 2  ;;  %s172_s5 = scalar_lea.sflag [#allocation3], %s1122_s28 }
  0x2e   : > { %s909_s6 = sshra.s32 %s180_s14, 4  ;;  %s916_s30 = scalar_lea.hbm %s1457_s0, 2  ;;  %s910_s6 = int_to_ptr.hbm [resolvable:$true] %s909_s6 }
  0x2f   : > { %s911_s11 = scalar_lea.hbm %s910_s6, 1  ;;  %p917_p0 = scmp.lt.s32.totalorder %s910_s6, %s1457_s0 }
  0x30   : > { %p912_p4 = scmp.ne.s32.totalorder %s910_s6, %s911_s11  ;;  %p918_p8 = scmp.lt.s32.totalorder %s916_s30, %s911_s11 }
  0x32   : > { %p914_p5 = pnand %p912_p4, %p883_p2  ;;  %p919_p10 = por %p918_p8, %p917_p0 }
  0x34   : > { %p915_p7 = pneg %p914_p5 }
  0x36   : > { %p920_p1 = pnand %p919_p10, %p915_p7 }
  0x38   : > { %923 = shalt.err (!%p920_p1)
}
  0x39   : > { %831 = dma.hbm_to_vmem [thread:$0]  (!%p1124_p13), %s180_s14, 16, %s182_s22, %s172_s5  }
  0x3a   : > { %s712_s28 = sshll.u32 %s1039_s18, 2  ;;  %s212_s12 = scalar_lea.vmem [#allocation7], %s711_s23 }
  0x3b   : > { %s216_s24 = scalar_lea.hbm %s1459_s2, %s712_s28  ;;  %s220_s7 = sshll.u32 %s212_s12, 4  ;;  %s221_s7 = int_to_ptr.vmem [resolvable:$true] %s220_s7 }
  0x3c   : > { %s218_s17 = sshll.u32 %s216_s24, 4  ;;  %s946_s22 = scalar_lea.hbm %s1459_s2, 8  ;;  %s219_s17 = int_to_ptr.hbm [resolvable:$true] %s218_s17 }
  0x3d   : > { %s939_s6 = sshra.s32 %s219_s17, 4  ;;  %s940_s6 = int_to_ptr.hbm [resolvable:$true] %s939_s6 }
  0x3e   : > { %s941_s11 = scalar_lea.hbm %s940_s6, 4  ;;  %p947_p0 = scmp.lt.s32.totalorder %s940_s6, %s1459_s2 }
  0x3f   : > { %p942_p4 = scmp.ne.s32.totalorder %s940_s6, %s941_s11  ;;  %p948_p8 = scmp.lt.s32.totalorder %s946_s22, %s941_s11 }
  0x41   : > { %p944_p5 = pnand %p942_p4, %p883_p2  ;;  %p949_p10 = por %p948_p8, %p947_p0 }
  0x43   : > { %p945_p7 = pneg %p944_p5 }
  0x45   : > { %p950_p1 = pnand %p949_p10, %p945_p7 }
  0x47   : > { %953 = shalt.err (!%p950_p1)
}
  0x48   : > { %837 = dma.hbm_to_vmem [thread:$0]  (!%p1124_p13), %s219_s17, 64, %s221_s7, %s1135_s13  }
  0x49   : > { %235 = sbr.rel (%p1158_p3) target bundleno = 459 (0x1cb), region = 36  ;;  %s1195_s24 = sand.u32 (!%p1158_p3), 1, %s1031_s16  }
  0x4a   : > { %s238_s23 = scalar_lea.sflag (!%p1158_p3), [#allocation3], %s1195_s24  ;;  %s240_s8 = scalar_lea.vmem (!%p1158_p3), [#allocation2], %s1195_s24 }
  0x4e   : > { %1014 = dma.done.wait (%p1106_p6), %s238_s23, 16  }
  0x4f   : > { %1016 = vsyncadd (%p1106_p6), %s238_s23, 4294967280  ;;  %s246_s17 = sand.u32 1, %s1088_s19   ;;  %s714_s29 = sshll.u32 %s1195_s24, 3 }
  0x50   : > { %s247_s13 = scalar_lea.sflag [#allocation6], %s246_s17  ;;  %s250_s10 = scalar_lea.vmem [#allocation5], %s714_s29 }
  0x51   : > { %1018 = dma.done.wait (%p1106_p6), %s247_s13, 192  }
  0x52   : > { %1020 = vsyncadd (%p1106_p6), %s247_s13, 4294967104  ;;  %v300_v0 = vlaneseq  ;;  %v1217_v7 = vld [vmem:[%s240_s8] ss:$0 sm:$0xff]  ;;  %v1219_v8 = vld [vmem:[%s250_s10] sm:$0xff]  ;;  %v1041_v12 = vmov 1.0   ;;  %p297_p6 = scmp.lt.s32.totalorder %s1088_s19, 1  ;;  %s587_s30 = scalar_lea.hbm %s1461_s4, %s1088_s19 }
  0x53   : > { %433 = vst [vmem:[#allocation1] ss:$2 sm:$0xff] %v1219_v8  ;;  %s715_s25 = sshll.u32 %s1195_s24, 2  ;;  %s296_s14 = scalar_lea.vmem [#allocation8], %s1195_s24 }
  0x54   : > { %v1210_v1 = vshrl.u32 %v300_v0, 7  ;;  %s298_s9 = scalar_select %p297_p6, %s1088_s19, 1 }
  0x55   : > { %s260_s7 = scalar_lea.vmem [#allocation7], %s715_s25  ;;  %s589_s22 = sshll.u32 %s296_s14, 4  ;;  %s590_s22 = int_to_ptr.vmem [resolvable:$true] %s589_s22 }
  0x56   : > { %v316_v2 = vadd.s32 120, %v1210_v1  ;;  %v315_v3 = vadd.s32 112, %v1210_v1  ;;  %v332_v4 = vadd.s32 248, %v1210_v1  ;;  %v314_v5 = vadd.s32 104, %v1210_v1  ;;  %s299_s12 = scalar_lea.vmem %s1460_s3, %s298_s9  ;;  %v535_v52 = vld [vmem:[%s260_s7] sm:$0xf] }
  0x57   : > { %v331_v6 = vadd.s32 240, %v1210_v1  ;;  %v330_v9 = vadd.s32 232, %v1210_v1  ;;  %v313_v10 = vadd.s32 96, %v1210_v1  ;;  %v329_v11 = vadd.s32 224, %v1210_v1  ;;  %v878_v54 = vld [vmem:[%s299_s12] ss:$0 sm:$0xff] }
  0x58   : > { %vm350_vm0 = vcmp.eq.s32.totalorder %v316_v2, %v1217_v7  ;;  %vm349_vm1 = vcmp.eq.s32.totalorder %v315_v3, %v1217_v7  ;;  %vm366_vm2 = vcmp.eq.s32.totalorder %v332_v4, %v1217_v7  ;;  %vm348_vm4 = vcmp.eq.s32.totalorder %v314_v5, %v1217_v7  ;;  %v534_v63 = vld [vmem:[%s299_s12] sm:$0x1]  ;;  %s591_s1 = sshll.u32 %s587_s30, 4  ;;  %s579_s8 = scalar_lea.sflag [#allocation4], %s1195_s24  ;;  %s592_s1 = int_to_ptr.hbm [resolvable:$true] %s591_s1 }
  0x59   : > { %780 = vmatpush.msk.msra.mxu2 %vm350_vm0, %v1041_v12  ;;  %796 = vmatpush.msk.msra.mxu3 %vm366_vm2, %v1041_v12  ;;  %vm365_vm3 = vcmp.eq.s32.totalorder %v331_v6, %v1217_v7  ;;  %vm364_vm5 = vcmp.eq.s32.totalorder %v330_v9, %v1217_v7  ;;  %v312_v13 = vadd.s32 88, %v1210_v1  ;;  %v328_v14 = vadd.s32 216, %v1210_v1  ;;  %s983_s17 = sshra.s32 %s592_s1, 4  ;;  %s989_s10 = scalar_lea.hbm %s1461_s4, 2  ;;  %s984_s17 = int_to_ptr.hbm [resolvable:$true] %s983_s17 }
  0x5a   : > { %748 = vmatpush.msk.msra.mxu0 %vm350_vm0, %v1041_v12  ;;  %764 = vmatpush.msk.msra.mxu1 %vm366_vm2, %v1041_v12  ;;  %vm347_vm6 = vcmp.eq.s32.totalorder %v313_v10, %v1217_v7  ;;  %vm363_vm7 = vcmp.eq.s32.totalorder %v329_v11, %v1217_v7  ;;  %v311_v15 = vadd.s32 80, %v1210_v1  ;;  %v327_v16 = vadd.s32 208, %v1210_v1  ;;  %v434_v21 = vld.sshfl [vmem:[#allocation1] sm:$0xff pattern:$0x75316420]  ;;  %s985_s29 = scalar_lea.hbm %s984_s17, 1  ;;  %p990_p4 = scmp.lt.s32.totalorder %s984_s17, %s1461_s4 }
  0x5b   : > { %781 = vmatpush.msk.msra.mxu2 %vm349_vm1, %v1041_v12  ;;  %797 = vmatpush.msk.msra.mxu3 %vm365_vm3, %v1041_v12  ;;  %vm346_vm8 = vcmp.eq.s32.totalorder %v312_v13, %v1217_v7  ;;  %vm362_vm9 = vcmp.eq.s32.totalorder %v328_v14, %v1217_v7  ;;  %v310_v17 = vadd.s32 72, %v1210_v1  ;;  %v326_v18 = vadd.s32 200, %v1210_v1  ;;  %v435_v22 = vld.sshfl [vmem:[#allocation1 + $0x8] sm:$0xff pattern:$0x75316420]  ;;  %p986_p13 = scmp.ne.s32.totalorder %s984_s17, %s985_s29  ;;  %p991_p5 = scmp.lt.s32.totalorder %s989_s10, %s985_s29 }
  0x5c   : > { %749 = vmatpush.msk.msra.mxu0 %vm349_vm1, %v1041_v12  ;;  %765 = vmatpush.msk.msra.mxu1 %vm365_vm3, %v1041_v12  ;;  %v309_v19 = vadd.s32 64, %v1210_v1  ;;  %v325_v20 = vadd.s32 192, %v1210_v1  ;;  %vm345_vm10 = vcmp.eq.s32.totalorder %v311_v15, %v1217_v7  ;;  %vm361_vm11 = vcmp.eq.s32.totalorder %v327_v16, %v1217_v7 }
  0x5d   : > { %782 = vmatpush.msk.msra.mxu2 %vm348_vm4, %v1041_v12  ;;  %798 = vmatpush.msk.msra.mxu3 %vm364_vm5, %v1041_v12  ;;  %vm344_vm12 = vcmp.eq.s32.totalorder %v310_v17, %v1217_v7  ;;  %vm360_vm13 = vcmp.eq.s32.totalorder %v326_v18, %v1217_v7  ;;  %v308_v23 = vadd.s32 56, %v1210_v1  ;;  %v324_v24 = vadd.s32 184, %v1210_v1  ;;  %p987_p2 = pnand %p986_p13, %p1113_p11  ;;  %p992_p7 = por %p991_p5, %p990_p4 }
  0x5e   : > { %750 = vmatpush.msk.msra.mxu0 %vm348_vm4, %v1041_v12  ;;  %766 = vmatpush.msk.msra.mxu1 %vm364_vm5, %v1041_v12  ;;  %v1287_v25 = vpack.c.bf16 %v435_v22, %v434_v21  ;;  %vm343_vm14 = vcmp.eq.s32.totalorder %v309_v19, %v1217_v7  ;;  %vm359_vm15 = vcmp.eq.s32.totalorder %v325_v20, %v1217_v7  ;;  %v307_v26 = vadd.s32 48, %v1210_v1 }
  0x5f   : > { %783 = vmatpush.msk.msra.mxu2 %vm347_vm6, %v1041_v12  ;;  %799 = vmatpush.msk.msra.mxu3 %vm363_vm7, %v1041_v12  ;;  %v323_v27 = vadd.s32 176, %v1210_v1  ;;  %v306_v28 = vadd.s32 40, %v1210_v1  ;;  %vm342_vm0 = vcmp.eq.s32.totalorder %v308_v23, %v1217_v7  ;;  %vm358_vm1 = vcmp.eq.s32.totalorder %v324_v24, %v1217_v7  ;;  %p988_p3 = pneg %p987_p2 }
  0x60   : > { %751 = vmatpush.msk.msra.mxu0 %vm347_vm6, %v1041_v12  ;;  %767 = vmatpush.msk.msra.mxu1 %vm363_vm7, %v1041_v12  ;;  %v439_v29 = vunpack.c.l.bf16 %v1287_v25  ;;  %v440_v30 = vunpack.c.h.bf16 %v1287_v25  ;;  %v322_v31 = vadd.s32 168, %v1210_v1  ;;  %vm444_vm2 = vcmask 1043456  }
  0x61   : > { %784 = vmatpush.msk.msra.mxu2 %vm346_vm8, %v1041_v12  ;;  %800 = vmatpush.msk.msra.mxu3 %vm362_vm9, %v1041_v12  ;;  %vm341_vm3 = vcmp.eq.s32.totalorder %v307_v26, %v1217_v7  ;;  %vm357_vm4 = vcmp.eq.s32.totalorder %v323_v27, %v1217_v7  ;;  %v305_v33 = vadd.s32 32, %v1210_v1  ;;  %v321_v34 = vadd.s32 160, %v1210_v1  ;;  %p993_p0 = pnand %p992_p7, %p988_p3 }
  0x62   : > { %752 = vmatpush.msk.msra.mxu0 %vm346_vm8, %v1041_v12  ;;  %768 = vmatpush.msk.msra.mxu1 %vm362_vm9, %v1041_v12  ;;  %v443_v32 = vrot.slane %v440_v30, 4  ;;  %vm340_vm5 = vcmp.eq.s32.totalorder %v306_v28, %v1217_v7  ;;  %vm356_vm6 = vcmp.eq.s32.totalorder %v322_v31, %v1217_v7  ;;  %v304_v36 = vadd.s32 24, %v1210_v1 }
  0x63   : > { %785 = vmatpush.msk.msra.mxu2 %vm345_vm10, %v1041_v12  ;;  %801 = vmatpush.msk.msra.mxu3 %vm361_vm11, %v1041_v12  ;;  %v320_v37 = vadd.s32 152, %v1210_v1  ;;  %vm339_vm7 = vcmp.eq.s32.totalorder %v305_v33, %v1217_v7  ;;  %vm355_vm8 = vcmp.eq.s32.totalorder %v321_v34, %v1217_v7  ;;  %v303_v39 = vadd.s32 16, %v1210_v1 }
  0x64   : > { %753 = vmatpush.msk.msra.mxu0 %vm345_vm10, %v1041_v12  ;;  %769 = vmatpush.msk.msra.mxu1 %vm361_vm11, %v1041_v12  ;;  %v445_v35 = vsel %vm444_vm2, %v439_v29, %v443_v32  ;;  %v319_v40 = vadd.s32 144, %v1210_v1  ;;  %vm338_vm9 = vcmp.eq.s32.totalorder %v304_v36, %v1217_v7  ;;  %v302_v41 = vadd.s32 8, %v1210_v1 }
  0x65   : > { %786 = vmatpush.msk.msra.mxu2 %vm344_vm12, %v1041_v12  ;;  %802 = vmatpush.msk.msra.mxu3 %vm360_vm13, %v1041_v12  ;;  %v447_v38 = vsub.f32 %v1219_v8, %v445_v35  ;;  %vm354_vm10 = vcmp.eq.s32.totalorder %v320_v37, %v1217_v7  ;;  %v318_v42 = vadd.s32 136, %v1210_v1  ;;  %vm337_vm11 = vcmp.eq.s32.totalorder %v303_v39, %v1217_v7 }
  0x66   : > { %754 = vmatpush.msk.msra.mxu0 %vm344_vm12, %v1041_v12  ;;  %770 = vmatpush.msk.msra.mxu1 %vm360_vm13, %v1041_v12  ;;  %vm353_vm12 = vcmp.eq.s32.totalorder %v319_v40, %v1217_v7  ;;  %v317_v43 = vadd.s32 128, %v1210_v1  ;;  %vm336_vm13 = vcmp.eq.s32.totalorder %v302_v41, %v1217_v7  ;;  %v571_v16 = vand.u32 127, %v300_v0 }
  0x67   : > { %787 = vmatpush.msk.msra.mxu2 %vm343_vm14, %v1041_v12  ;;  %803 = vmatpush.msk.msra.mxu3 %vm359_vm15, %v1041_v12  ;;  %449 = vst [vmem:[#allocation1] ss:$2 sm:$0xff] %v447_v38 }
  0x68   : > { %755 = vmatpush.msk.msra.mxu0 %vm343_vm14, %v1041_v12  ;;  %771 = vmatpush.msk.msra.mxu1 %vm359_vm15, %v1041_v12  ;;  %vm352_vm14 = vcmp.eq.s32.totalorder %v318_v42, %v1217_v7  ;;  %vm335_vm15 = vcmp.eq.s32.totalorder %v1210_v1, %v1217_v7 }
  0x69   : > { %788 = vmatpush.msk.msra.mxu2 %vm342_vm0, %v1041_v12  ;;  %804 = vmatpush.msk.msra.mxu3 %vm358_vm1, %v1041_v12 }
  0x6a   : > { %756 = vmatpush.msk.msra.mxu0 %vm342_vm0, %v1041_v12  ;;  %772 = vmatpush.msk.msra.mxu1 %vm358_vm1, %v1041_v12  ;;  %vm351_vm0 = vcmp.eq.s32.totalorder %v317_v43, %v1217_v7 }
  0x6b   : > { %789 = vmatpush.msk.msra.mxu2 %vm341_vm3, %v1041_v12  ;;  %805 = vmatpush.msk.msra.mxu3 %vm357_vm4, %v1041_v12 }
  0x6c   : > { %757 = vmatpush.msk.msra.mxu0 %vm341_vm3, %v1041_v12  ;;  %773 = vmatpush.msk.msra.mxu1 %vm357_vm4, %v1041_v12  ;;  %vm558_vm3 = vcmask 1040384   ;;  %vm576_vm4 = vcmask 8192  }
  0x6d   : > { %790 = vmatpush.msk.msra.mxu2 %vm340_vm5, %v1041_v12  ;;  %806 = vmatpush.msk.msra.mxu3 %vm356_vm6, %v1041_v12  ;;  %v559_v1 = vsel %vm558_vm3, %v534_v63, 0.0 }
  0x6e   : > { %758 = vmatpush.msk.msra.mxu0 %vm340_vm5, %v1041_v12  ;;  %774 = vmatpush.msk.msra.mxu1 %vm356_vm6, %v1041_v12  ;;  %v450_v44 = vld.sshfl [vmem:[#allocation1] sm:$0xff pattern:$0x75316420]  ;;  %v451_v45 = vld.sshfl [vmem:[#allocation1 + $0x8] sm:$0xff pattern:$0x75316420] }
  0x6f   : > { %791 = vmatpush.msk.msra.mxu2 %vm339_vm7, %v1041_v12  ;;  %807 = vmatpush.msk.msra.mxu3 %vm355_vm8, %v1041_v12 }
  0x70   : > { %759 = vmatpush.msk.msra.mxu0 %vm339_vm7, %v1041_v12  ;;  %775 = vmatpush.msk.msra.mxu1 %vm355_vm8, %v1041_v12 }
  0x71   : > { %792 = vmatpush.msk.msra.mxu2 %vm338_vm9, %v1041_v12  ;;  %808 = vmatpush.msk.msra.mxu3 %vm354_vm10, %v1041_v12 }
  0x72   : > { %760 = vmatpush.msk.msra.mxu0 %vm338_vm9, %v1041_v12  ;;  %776 = vmatpush.msk.msra.mxu1 %vm354_vm10, %v1041_v12 }
  0x73   : > { %793 = vmatpush.msk.msra.mxu2 %vm337_vm11, %v1041_v12  ;;  %809 = vmatpush.msk.msra.mxu3 %vm353_vm12, %v1041_v12 }
  0x74   : > { %761 = vmatpush.msk.msra.mxu0 %vm337_vm11, %v1041_v12  ;;  %777 = vmatpush.msk.msra.mxu1 %vm353_vm12, %v1041_v12 }
  0x75   : > { %794 = vmatpush.msk.msra.mxu2 %vm336_vm13, %v1041_v12  ;;  %810 = vmatpush.msk.msra.mxu3 %vm352_vm14, %v1041_v12 }
  0x76   : > { %762 = vmatpush.msk.msra.mxu0 %vm336_vm13, %v1041_v12  ;;  %778 = vmatpush.msk.msra.mxu1 %vm352_vm14, %v1041_v12 }
  0x77   : > { %795 = vmatpush.msk.msra.mxu2 %vm335_vm15, %v1041_v12  ;;  %811 = vmatpush.msk.msra.mxu3 %vm351_vm0, %v1041_v12 }
  0x78   : > { %510 = vmatmul.f32.vlgmr.msra.gmra.mxu2 %v439_v29  ;;  %530 = vmatmul.f32.vlgmr.msra.gmra.mxu3 %v440_v30 }
  0x79   : > { %763 = vmatpush.msk.msra.mxu0 %vm335_vm15, %v1041_v12  ;;  %779 = vmatpush.msk.msra.mxu1 %vm351_vm0, %v1041_v12 }
  0x7a   : > { %470 = vmatmul.f32.vlgmr.msra.gmra.mxu0 %v450_v44  ;;  %490 = vmatmul.f32.vlgmr.msra.gmra.mxu1 %v451_v45 }
  0xf7   : > { %v471_v46 = vpop.f32.mrf.mxu0  ;;  %v491_v47 = vpop.f32.mrf.mxu1 }
  0xf8   : > { %v492_v48 = vadd.f32 %v491_v47, %v471_v46 }
  0xfb   : > { %v511_v49 = vpop.f32.mrf.mxu2  ;;  %v531_v50 = vpop.f32.mrf.mxu3 }
  0xfc   : > { %v512_v51 = vadd.f32 %v511_v49, %v492_v48 }
  0xfe   : > { %v532_v53 = vadd.f32 %v531_v50, %v512_v51 }
 0x100   : > { %v536_v55 = vsub.f32 %v532_v53, %v535_v52 }
 0x102   : > { %v540_v56 = vmul.f32 %v878_v54, %v536_v55 }
 0x104   : > { %v541_v57 = vand.u32 2147483647, %v540_v56 }
 0x106   : > { %v543_v58 = vmul.f32 0.5, %v541_v57  ;;  %v812_v60 = vadd.f32 -0.5, %v541_v57  ;;  %vm542_vm1 = vcmp.lt.f32.partialorder %v541_v57, 1.0 }
 0x108   : > { %v544_v59 = vmul.f32 %v543_v58, %v541_v57 }
 0x10a   : > { %v546_v61 = vsel %vm542_vm1, %v544_v59, %v812_v60 }
 0x10b   : > { %v547_v62 = vsel %vm444_vm2, %v546_v61, 0.0  ;;  %vm572_vm2 = vcmp.eq.s32.totalorder %v571_v16, 0 }
 0x10c   : > { %548 = vadd.xlane.f32.xlu0 %v547_v62 }
 0x114   : > { %560 = vadd.xlane.f32.xlu0 %v559_v1 }
 0x17f   : > { %v549_v2 = vpop.xlane.xlu0 %548 }
 0x180   : > { %v550_v3 = vrot.slane %v549_v2, 4 }
 0x182   : > { %v551_v4 = vadd.f32 %v550_v3, %v549_v2 }
 0x184   : > { %v552_v5 = vrot.slane %v551_v4, 2 }
 0x186   : > { %v553_v6 = vadd.f32 %v552_v5, %v551_v4 }
 0x187   : > { %v561_v7 = vpop.xlane.xlu0 %560 }
 0x188   : > { %v562_v8 = vrot.slane %v561_v7, 4  ;;  %v554_v9 = vrot.slane %v553_v6, 1 }
 0x18a   : > { %v563_v10 = vadd.f32 %v562_v8, %v561_v7  ;;  %v555_v11 = vadd.f32 %v554_v9, %v553_v6 }
 0x18c   : > { %v564_v12 = vrot.slane %v563_v10, 2  ;;  %816 = vpush %v555_v11 }
 0x18e   : > { %v565_v13 = vadd.f32 %v564_v12, %v563_v10 }
 0x190   : > { %v566_v14 = vrot.slane %v565_v13, 1 }
 0x192   : > { %v567_v15 = vadd.f32 %v566_v14, %v565_v13 }
 0x194   : > { %818 = vpush %v567_v15 }
 0x1bd   : > { %s817_s5 = spop %816 }
 0x1be   : > { %v573_v17 = vstv %s817_s5 }
 0x1c5   : > { %s819_s23 = spop %818 }
 0x1c6   : > { %v574_v18 = vstv %s819_s23 }
 0x1c7   : > { %v575_v19 = vsel %vm572_vm2, %v573_v17, %v574_v18 }
 0x1c8   : > { %577 = vst.msk [vmem:[%s296_s14] sm:$0x1] %vm576_vm4, %v575_v19 }
 0x1c9   : > { %996 = shalt.err (!%p993_p0)
}
 0x1ca   : > { %826 = dma.vmem_to_hbm [thread:$0]  (%p1113_p11), %s590_s22, 16, %s592_s1, %s579_s8  }
 0x1cb PF: > { %s603_s24 = sand.u32 1, %s1027_s15   ;;  %p839_p8 = pnand %p707_p9, %p1117_p12 }
 0x1cc   : > { %s604_s28 = scalar_lea.sflag [#allocation4], %s603_s24 }
 0x1cd   : > { %p840_p10 = pneg %p839_p8 }
 0x1cf   : > { %1022 = dma.done.wait (%p840_p10), %s604_s28, 16  }
 0x1d0   : > { %1024 = vsyncadd (%p840_p10), %s604_s28, 4294967280  ;;  %s1472_s20 = sld [smem:[#allocation12_spill]]  ;;  %p20_p1 = scmp.ge.s32.totalorder %s1092_s21, 4  }
 0x1d1   : > { %s1473_s17 = sld [smem:[#allocation13_spill]]  ;;  %s1474_s15 = smov %s1031_s16 }
 0x1d2   : > { %s1476_s18 = smov %s1092_s21  ;;  %22 = sbr.rel (!%p20_p1) target bundleno = 9 (0x9), region = 108 }
 0x1d6   : > { %s1475_s16 = smov %s1472_s20 }
 0x1d7   :  { %609 = vsyncpa [#allocation3], 1 }
 0x1d8   :  { %611 = vsyncpa [#allocation3 + $0x1], 1 }
 0x1d9   :  { %612 = vsyncpa [#allocation6], 1 }
 0x1da   :  { %614 = vsyncpa [#allocation6 + $0x1], 1 }
 0x1db   :  { %615 = vsyncpa [#allocation4], 1 }
 0x1dc   :  { %617 = vsyncpa [#allocation4 + $0x1], 1 }

</bundles_post_ra>
